<compile_context>
chip_gen: v7x
topology: tpu7x:2x2x1
jax: 0.10.0
libtpu: 0.0.40
codegen_flags: <defaults>
</compile_context>

<pallas_src>
import jax
import jax.numpy as jnp
from jax import lax
from jax.experimental import pallas as pl
from jax.experimental.pallas import tpu as pltpu


def _round_up(v: int, m: int) -> int:
    return ((v + m - 1) // m) * m


def _has_two_tensorcores() -> bool:
    """True on chips whose 'parallel' grid axes are sharded across 2 TCs."""
    try:
        kind = jax.devices()[0].device_kind.lower()
    except Exception:
        return False
    return ("v7" in kind) or ("v5p" in kind) or ("v4" in kind)


_NATIVE_SCAN_SUPPORTED = None


def _native_scan_supported() -> bool:
    """Probe (once) whether lax.cumsum lowers inside a Pallas TPU kernel."""
    global _NATIVE_SCAN_SUPPORTED
    if _NATIVE_SCAN_SUPPORTED is None:
        def probe(x_ref, o_ref):
            o_ref[...] = lax.cumsum(x_ref[...], axis=1)
        try:
            x = jnp.zeros((8, 128), jnp.float32)
            jax.block_until_ready(
                pl.pallas_call(
                    probe,
                    out_shape=jax.ShapeDtypeStruct((8, 128), jnp.float32),
                )(x))
            _NATIVE_SCAN_SUPPORTED = True
        except Exception:
            _NATIVE_SCAN_SUPPORTED = False
    return _NATIVE_SCAN_SUPPORTED


def _choose_tiles(b, s, tb_cap, ts_cap, two_cores):
    """Pick (tb, ts, n_b, n_s) obeying the (8, 128) block constraint."""
    tb_cap = max(8, (tb_cap // 8) * 8)
    ts_cap = max(128, (ts_cap // 128) * 128)

    # Seq tiles: always a lane-dense multiple of 128; the (possibly padded)
    # trailing tile is masked inside the kernel.
    s_pad = _round_up(s, 128)
    ts = min(s_pad, ts_cap)
    n_s = pl.cdiv(s_pad, ts)

    # Batch tiles: full batch if it fits, but guarantee >=2 blocks on
    # dual-TensorCore chips so megacore sharding has something to split.
    if b <= tb_cap:
        tb = b
        if two_cores and b >= 16:
            tb = min(tb_cap, _round_up(-(-b // 2), 8))
    else:
        tb = tb_cap
    n_b = pl.cdiv(b, tb)
    return tb, ts, n_b, n_s


def _make_kernel(s, ts, n_s, needs_mask, native_scan):
    n_groups = ts // 128

    def kernel(x_ref, o_ref, carry_ref):
        k = pl.program_id(1)  # k == 0  <=>  right-most (last-in-sequence) tile

        @pl.when(k == 0)
        def _():
            carry_ref[...] = jnp.zeros_like(carry_ref)

        x = x_ref[...].astype(jnp.float32)

        if needs_mask:
            # Zero lanes that lie beyond the real sequence length so they do
            # not pollute the scan or the carry (only the k==0 tile can have
            # them; the compare/select is cheap VPU work).
            blk = n_s - 1 - k
            col = blk * ts + lax.broadcasted_iota(jnp.int32, x.shape, 1)
            x = jnp.where(col < s, x, 0.0)

        carry = carry_ref[...]          # (tb, 128), lane-replicated
        carry_col = carry[:, :1]        # (tb, 1): sum of everything to the right

        if native_scan:
            # Reverse inclusive scan via a forward scan + identity.
            fwd = lax.cumsum(x, axis=1)
            row_total = fwd[:, -1:]                     # (tb, 1)
            rev = row_total - fwd + x
            o_ref[...] = (rev + carry_col).astype(o_ref.dtype)
            carry_ref[...] = carry + row_total          # unmasked (tb,128) vst
        else:
            # Hand-rolled scan: Hillis-Steele within each 128-lane group
            # (7 pltpu.roll + masked add steps), then a sequential per-group
            # suffix carry (VPU only).
            lane = lax.broadcasted_iota(jnp.int32, x.shape, 1)
            local = jnp.bitwise_and(lane, 127)          # lane index within group
            y = x
            for sh in (1, 2, 4, 8, 16, 32, 64):
                shifted = pltpu.roll(y, ts - sh, axis=1)   # y[i] <- y[i + sh]
                y = y + jnp.where(local < (128 - sh), shifted, 0.0)
            # y[:, g*128 + p] = sum of x over lanes p..127 of group g.
            suffix = carry_col
            for g in range(n_groups - 1, -1, -1):
                lo = g * 128
                seg = y[:, lo:lo + 128]
                o_ref[:, lo:lo + 128] = (seg + suffix).astype(o_ref.dtype)
                suffix = suffix + seg[:, :1]            # add this group's total
            carry_ref[...] = jnp.broadcast_to(suffix, carry_ref.shape)

    return kernel


def reverse_cumsum(x: jax.Array, *, dim: int = 1,
                   tb_cap: int = 512, ts_cap: int = 2048) -> jax.Array:
    """Reverse cumsum over dim=1 of a 2-D array (matches the CUDA kernel)."""
    assert x.ndim == 2, "kernel expects (batch, seq_len)"
    assert dim in (1, -1), "reference CUDA kernel only supports dim=1"
    b, s = x.shape

    two_cores = _has_two_tensorcores()
    tb, ts, n_b, n_s = _choose_tiles(b, s, tb_cap, ts_cap, two_cores)
    needs_mask = (n_s * ts) > s
    native = _native_scan_supported()

    kernel = _make_kernel(s, ts, n_s, needs_mask, native)

    # Traverse seq tiles right-to-left so the carry flows toward the start.
    def idx(i, k):
        return (i, n_s - 1 - k)

    # Double-buffered in + out tiles plus the carry, with headroom.
    buf_bytes = 4 * tb * ts * x.dtype.itemsize + tb * 128 * 4
    vmem_limit = min(100 * 1024 * 1024,
                     max(32 * 1024 * 1024, int(buf_bytes * 1.5)))

    return pl.pallas_call(
        kernel,
        out_shape=jax.ShapeDtypeStruct((b, s), x.dtype),
        grid_spec=pltpu.PrefetchScalarGridSpec(
            num_scalar_prefetch=0,
            grid=(n_b, n_s),
            in_specs=[pl.BlockSpec((tb, ts), idx)],
            out_specs=pl.BlockSpec((tb, ts), idx),
            scratch_shapes=[pltpu.VMEM((tb, 128), jnp.float32)],
        ),
        compiler_params=pltpu.CompilerParams(
            # Batch tiles independent -> megacore/dual-TC sharding;
            # seq axis carries the running sum -> sequential.
            dimension_semantics=("parallel", "arbitrary"),
            vmem_limit_bytes=vmem_limit,
        ),
    )(x)


if __name__ == "__main__":
    key = jax.random.PRNGKey(0)

    def ref(x):
        return jnp.flip(jnp.cumsum(jnp.flip(x, axis=1), axis=1), axis=1)

    # 1) Single-tile path.
    x1 = jax.random.normal(key, (4, 128), dtype=jnp.float32)
    o1 = jax.block_until_ready(reverse_cumsum(x1))
    assert o1.shape == x1.shape and o1.dtype == x1.dtype
    assert jnp.allclose(o1, ref(x1), rtol=1e-4, atol=1e-4), "mismatch (single tile)"

    # 2) Multiple batch tiles + reverse-ordered seq tiles (carry path).
    x2 = jax.random.normal(jax.random.fold_in(key, 1), (16, 512), dtype=jnp.float32)
    o2 = jax.block_until_ready(reverse_cumsum(x2, tb_cap=8, ts_cap=128))
    assert jnp.allclose(o2, ref(x2), rtol=1e-4, atol=1e-4), "mismatch (tiled carry)"

    # 3) seq_len not a multiple of 128: padded + masked trailing tile with the
    #    carry crossing it (grid (1, 2)).
    x3 = jax.random.normal(jax.random.fold_in(key, 2), (8, 200), dtype=jnp.float32)
    o3 = jax.block_until_ready(reverse_cumsum(x3, ts_cap=128))
    assert jnp.allclose(o3, ref(x3), rtol=1e-4, atol=1e-4), "mismatch (masked seq)"

    # 4) Partial trailing batch block + masked single seq tile.
    x4 = jax.random.normal(jax.random.fold_in(key, 3), (10, 96), dtype=jnp.float32)
    o4 = jax.block_until_ready(reverse_cumsum(x4, tb_cap=8))
    assert jnp.allclose(o4, ref(x4), rtol=1e-4, atol=1e-4), "mismatch (partial batch)"

    print("KERNEL_OK")
</pallas_src>

<mosaic_0001>
module attributes {stable_mosaic.version = 11 : i64} {
  func.func @kernel(%arg0: i32, %arg1: i32, %arg2: memref<4x128xf32, #tpu.memory_space<vmem>>, %arg3: memref<4x128xf32, #tpu.memory_space<vmem>>, %arg4: memref<4x128xf32, #tpu.memory_space<vmem>>) attributes {dimension_semantics = [#tpu.dimension_semantics<parallel>, #tpu.dimension_semantics<arbitrary>], iteration_bounds = array<i64: 1, 1>, scalar_prefetch = 0 : i64, scratch_operands = 1 : i64, tpu.core_type = #tpu.core_type<tc>, window_params = [{transform_indices = @transform_0, window_bounds = array<i64: 4, 128>}, {transform_indices = @transform_1, window_bounds = array<i64: 4, 128>}]} {
    %c0_i32 = arith.constant 0 : i32
    %0 = arith.cmpi eq, %arg1, %c0_i32 : i32
    %1 = arith.extui %0 : i1 to i32
    %c0_i32_0 = arith.constant 0 : i32
    %2 = arith.cmpi ne, %1, %c0_i32_0 : i32
    scf.if %2 {
      %cst_22 = arith.constant 0.000000e+00 : f32
      %59 = vector.broadcast %cst_22 : f32 to vector<4x128xf32>
      %c0_23 = arith.constant 0 : index
      %c0_24 = arith.constant 0 : index
      %60 = vector.load %arg4[%c0_23, %c0_24] : memref<4x128xf32, #tpu.memory_space<vmem>>, vector<4x128xf32>
      tpu.vector_store %arg4[%c0_23, %c0_24], %59 {strides = array<i32>} : memref<4x128xf32, #tpu.memory_space<vmem>>, vector<4x128xf32>,
    } else {
    }
    %c0 = arith.constant 0 : index
    %c0_1 = arith.constant 0 : index
    %3 = vector.load %arg2[%c0, %c0_1] : memref<4x128xf32, #tpu.memory_space<vmem>>, vector<4x128xf32>
    %c0_2 = arith.constant 0 : index
    %c0_3 = arith.constant 0 : index
    %4 = vector.load %arg4[%c0_2, %c0_3] : memref<4x128xf32, #tpu.memory_space<vmem>>, vector<4x128xf32>
    %5 = vector.extract_strided_slice %4 {offsets = [0, 0], sizes = [4, 1], strides = [1, 1]} : vector<4x128xf32> to vector<4x1xf32>
    %6 = tpu.iota {dimensions = array<i32: 1>} : vector<4x128xi32>
    %c127_i32 = arith.constant 127 : i32
    %7 = vector.broadcast %c127_i32 : i32 to vector<4x128xi32>
    %8 = arith.andi %6, %7 : vector<4x128xi32>
    %c127_i32_4 = arith.constant 127 : i32
    %9 = tpu.dynamic_rotate %3 by %c127_i32_4 dim 1 : vector<4x128xf32>, i32 -> vector<4x128xf32>
    %c127_i32_5 = arith.constant 127 : i32
    %10 = vector.broadcast %c127_i32_5 : i32 to vector<4x128xi32>
    %11 = arith.cmpi slt, %8, %10 : vector<4x128xi32>
    %cst = arith.constant 0.000000e+00 : f32
    %12 = vector.broadcast %cst : f32 to vector<4x128xf32>
    %13 = arith.select %11, %9, %12 : vector<4x128xi1>, vector<4x128xf32>
    %14 = arith.addf %3, %13 : vector<4x128xf32>
    %c126_i32 = arith.constant 126 : i32
    %15 = tpu.dynamic_rotate %14 by %c126_i32 dim 1 : vector<4x128xf32>, i32 -> vector<4x128xf32>
    %c126_i32_6 = arith.constant 126 : i32
    %16 = vector.broadcast %c126_i32_6 : i32 to vector<4x128xi32>
    %17 = arith.cmpi slt, %8, %16 : vector<4x128xi32>
    %cst_7 = arith.constant 0.000000e+00 : f32
    %18 = vector.broadcast %cst_7 : f32 to vector<4x128xf32>
    %19 = arith.select %17, %15, %18 : vector<4x128xi1>, vector<4x128xf32>
    %20 = arith.addf %14, %19 : vector<4x128xf32>
    %c124_i32 = arith.constant 124 : i32
    %21 = tpu.dynamic_rotate %20 by %c124_i32 dim 1 : vector<4x128xf32>, i32 -> vector<4x128xf32>
    %c124_i32_8 = arith.constant 124 : i32
    %22 = vector.broadcast %c124_i32_8 : i32 to vector<4x128xi32>
    %23 = arith.cmpi slt, %8, %22 : vector<4x128xi32>
    %cst_9 = arith.constant 0.000000e+00 : f32
    %24 = vector.broadcast %cst_9 : f32 to vector<4x128xf32>
    %25 = arith.select %23, %21, %24 : vector<4x128xi1>, vector<4x128xf32>
    %26 = arith.addf %20, %25 : vector<4x128xf32>
    %c120_i32 = arith.constant 120 : i32
    %27 = tpu.dynamic_rotate %26 by %c120_i32 dim 1 : vector<4x128xf32>, i32 -> vector<4x128xf32>
    %c120_i32_10 = arith.constant 120 : i32
    %28 = vector.broadcast %c120_i32_10 : i32 to vector<4x128xi32>
    %29 = arith.cmpi slt, %8, %28 : vector<4x128xi32>
    %cst_11 = arith.constant 0.000000e+00 : f32
    %30 = vector.broadcast %cst_11 : f32 to vector<4x128xf32>
    %31 = arith.select %29, %27, %30 : vector<4x128xi1>, vector<4x128xf32>
    %32 = arith.addf %26, %31 : vector<4x128xf32>
    %c112_i32 = arith.constant 112 : i32
    %33 = tpu.dynamic_rotate %32 by %c112_i32 dim 1 : vector<4x128xf32>, i32 -> vector<4x128xf32>
    %c112_i32_12 = arith.constant 112 : i32
    %34 = vector.broadcast %c112_i32_12 : i32 to vector<4x128xi32>
    %35 = arith.cmpi slt, %8, %34 : vector<4x128xi32>
    %cst_13 = arith.constant 0.000000e+00 : f32
    %36 = vector.broadcast %cst_13 : f32 to vector<4x128xf32>
    %37 = arith.select %35, %33, %36 : vector<4x128xi1>, vector<4x128xf32>
    %38 = arith.addf %32, %37 : vector<4x128xf32>
    %c96_i32 = arith.constant 96 : i32
    %39 = tpu.dynamic_rotate %38 by %c96_i32 dim 1 : vector<4x128xf32>, i32 -> vector<4x128xf32>
    %c96_i32_14 = arith.constant 96 : i32
    %40 = vector.broadcast %c96_i32_14 : i32 to vector<4x128xi32>
    %41 = arith.cmpi slt, %8, %40 : vector<4x128xi32>
    %cst_15 = arith.constant 0.000000e+00 : f32
    %42 = vector.broadcast %cst_15 : f32 to vector<4x128xf32>
    %43 = arith.select %41, %39, %42 : vector<4x128xi1>, vector<4x128xf32>
    %44 = arith.addf %38, %43 : vector<4x128xf32>
    %c64_i32 = arith.constant 64 : i32
    %45 = tpu.dynamic_rotate %44 by %c64_i32 dim 1 : vector<4x128xf32>, i32 -> vector<4x128xf32>
    %c64_i32_16 = arith.constant 64 : i32
    %46 = vector.broadcast %c64_i32_16 : i32 to vector<4x128xi32>
    %47 = arith.cmpi slt, %8, %46 : vector<4x128xi32>
    %cst_17 = arith.constant 0.000000e+00 : f32
    %48 = vector.broadcast %cst_17 : f32 to vector<4x128xf32>
    %49 = arith.select %47, %45, %48 : vector<4x128xi1>, vector<4x128xf32>
    %50 = arith.addf %44, %49 : vector<4x128xf32>
    %51 = vector.broadcast %5 : vector<4x1xf32> to vector<4x128xf32>
    %52 = arith.addf %50, %51 : vector<4x128xf32>
    %c0_18 = arith.constant 0 : index
    %c0_19 = arith.constant 0 : index
    %53 = vector.load %arg3[%c0_18, %c0_19] : memref<4x128xf32, #tpu.memory_space<vmem>>, vector<4x128xf32>
    tpu.vector_store %arg3[%c0_18, %c0_19], %52 {strides = array<i32>} : memref<4x128xf32, #tpu.memory_space<vmem>>, vector<4x128xf32>,
    %54 = vector.extract_strided_slice %50 {offsets = [0, 0], sizes = [4, 1], strides = [1, 1]} : vector<4x128xf32> to vector<4x1xf32>
    %55 = arith.addf %5, %54 : vector<4x1xf32>
    %56 = vector.shape_cast %55 : vector<4x1xf32> to vector<4x1xf32>
    %57 = vector.broadcast %56 : vector<4x1xf32> to vector<4x128xf32>
    %c0_20 = arith.constant 0 : index
    %c0_21 = arith.constant 0 : index
    %58 = vector.load %arg4[%c0_20, %c0_21] : memref<4x128xf32, #tpu.memory_space<vmem>>, vector<4x128xf32>
    tpu.vector_store %arg4[%c0_20, %c0_21], %57 {strides = array<i32>} : memref<4x128xf32, #tpu.memory_space<vmem>>, vector<4x128xf32>,
    return
  }
  func.func @transform_0(%arg0: i32, %arg1: i32) -> (i32, i32) {
    %c0_i32 = arith.constant 0 : i32
    %0 = arith.subi %c0_i32, %arg1 : i32
    %c0_i32_0 = arith.constant 0 : i32
    return %arg0, %0 : i32, i32
  }
  func.func @transform_1(%arg0: i32, %arg1: i32) -> (i32, i32) {
    %c0_i32 = arith.constant 0 : i32
    %0 = arith.subi %c0_i32, %arg1 : i32
    %c0_i32_0 = arith.constant 0 : i32
    return %arg0, %0 : i32, i32
  }
}

</mosaic_0001>

<bundles_post_ra>
// kernel: tpu_custom_call.1
= control target key start
LH: loop header
LB: loop body
LE: loop exit
PB: predicated region body
PF: predicated region fallthrough
CT: control target
= control target key end

     0   :  { %6 = vsyncpa [#allocation4], 0  ;;  %s213_s0 = inlined_call_operand.hbm [shape: f32[4,128], index: 0, kind: input, shape index: {}]   ;;  %s214_s1 = inlined_call_operand.hbm [shape: f32[4,128], index: 1, kind: output, shape index: {}]  }
   0x1   :  { %7 = vsyncpa [#allocation5], 0  ;;  %s168_s6 = smov [#allocation3]   ;;  %s120_s10 = scalar_lea.hbm %s213_s0, 64 }
   0x2   :  { %s17_s7 = sshll.u32 %s168_s6, 4  ;;  %p121_p0 = scmp.ne.s32.totalorder %s213_s0, %s120_s10  ;;  %s18_s7 = int_to_ptr.vmem [resolvable:$true] %s17_s7 }
   0x3   :  { %p124_p1 = scmp.lt.u32.totalorder %s120_s10, %s213_s0 }
   0x5   :  { %p126_p2 = pnand %p124_p1, %p121_p0 }
   0x7   :  { %129 = shalt.err (!%p126_p2)
}
   0x8   :  { %s130_s15 = scalar_lea.vmem %s18_s7, 64  ;;  %p135_p4 = scmp.lt.s32.totalorder %s18_s7, %s18_s7 }
   0x9   :  { %p131_p3 = scmp.ne.s32.totalorder %s18_s7, %s130_s15  ;;  %p136_p5 = scmp.lt.s32.totalorder %s130_s15, %s130_s15 }
   0xb   :  { %p137_p6 = por %p136_p5, %p135_p4 }
   0xd   :  { %p138_p7 = pnand %p137_p6, %p131_p3 }
   0xf   :  { %141 = shalt.err (!%p138_p7)
}
  0x10   :  { %20 = dma.hbm_to_vmem [thread:$0]  %s213_s0, 64, %s18_s7, [#allocation4]  }
  0x11   :  { %164 = dma.done.wait [#allocation4], 64  }
  0x12   :  { %165 = vsyncadd [#allocation4], 4294967232  ;;  %v169_v0 = vmov 0.0   ;;  %v31_v1 = vld [vmem:[#allocation3] sm:$0xf]  ;;  %s170_s18 = smov 127   ;;  %v33_v2 = vlaneseq }
  0x13   :  { %30 = vst [vmem:[#allocation2] sm:$0xf] %v169_v0  ;;  %36 = vrot.lane.b32.xlu0 %v31_v1, %s170_s18  ;;  %s171_s19 = smov 126   ;;  %s172_s0 = smov 124   ;;  %v174_v13 = vmov 0  }
  0x14   :  { %v34_v3 = vand.u32 127, %v33_v2  ;;  %s173_s20 = smov 120   ;;  %118 = vset.pattern.permute.xlu1 %v174_v13  ;;  %119 = vset.pattern.permute.xlu0 %v174_v13  ;;  %s175_s21 = smov 112  }
  0x15   :  { %s176_s22 = smov 96   ;;  %s177_s23 = smov 64  }
  0x16   :  { %vm38_vm0 = vcmp.lt.s32.totalorder %v34_v3, 127  ;;  %vm43_vm1 = vcmp.lt.s32.totalorder %v34_v3, 126  ;;  %vm48_vm2 = vcmp.lt.s32.totalorder %v34_v3, 124  ;;  %vm53_vm3 = vcmp.lt.s32.totalorder %v34_v3, 120  ;;  %s178_s24 = smov [#allocation6]  }
  0x17   :  { %vm58_vm4 = vcmp.lt.s32.totalorder %v34_v3, 112  ;;  %vm63_vm5 = vcmp.lt.s32.totalorder %v34_v3, 96  ;;  %vm68_vm6 = vcmp.lt.s32.totalorder %v34_v3, 64  ;;  %s94_s25 = sshll.u32 %s178_s24, 4  ;;  %s95_s25 = int_to_ptr.vmem [resolvable:$true] %s94_s25 }
  0x18   :  { %s142_s26 = scalar_lea.vmem %s95_s25, 64  ;;  %p147_p9 = scmp.lt.s32.totalorder %s95_s25, %s95_s25 }
  0x19   :  { %p143_p8 = scmp.ne.s32.totalorder %s95_s25, %s142_s26  ;;  %p148_p10 = scmp.lt.s32.totalorder %s142_s26, %s142_s26 }
  0x1a   :  { %v32_v20 = vld [vmem:[#allocation2] sm:$0xf] }
  0x1b   :  { %p149_p11 = por %p148_p10, %p147_p9 }
  0x1d   :  { %p150_p12 = pnand %p149_p11, %p143_p8 }
  0x85   :  { %v37_v4 = vpop.permute.xlu0 %36 }
  0x86   :  { %v39_v5 = vsel %vm38_vm0, %v37_v4, 0.0 }
  0x87   :  { %v40_v6 = vadd.f32 %v39_v5, %v31_v1 }
  0x89   :  { %41 = vrot.lane.b32.xlu0 %v40_v6, %s171_s19 }
  0xfb   :  { %v42_v7 = vpop.permute.xlu0 %41 }
  0xfc   :  { %v44_v8 = vsel %vm43_vm1, %v42_v7, 0.0 }
  0xfd   :  { %v45_v9 = vadd.f32 %v44_v8, %v40_v6 }
  0xff   :  { %46 = vrot.lane.b32.xlu1 %v45_v9, %s172_s0 }
 0x171   :  { %v47_v10 = vpop.permute.xlu1 %46 }
 0x172   :  { %v49_v11 = vsel %vm48_vm2, %v47_v10, 0.0 }
 0x173   :  { %v50_v12 = vadd.f32 %v49_v11, %v45_v9 }
 0x175   :  { %51 = vrot.lane.b32.xlu1 %v50_v12, %s173_s20 }
 0x1e7   :  { %v52_v14 = vpop.permute.xlu1 %51 }
 0x1e8   :  { %v54_v15 = vsel %vm53_vm3, %v52_v14, 0.0 }
 0x1e9   :  { %v55_v16 = vadd.f32 %v54_v15, %v50_v12 }
 0x1eb   :  { %56 = vrot.lane.b32.xlu0 %v55_v16, %s175_s21 }
 0x25d   :  { %v57_v17 = vpop.permute.xlu0 %56 }
 0x25e   :  { %v59_v18 = vsel %vm58_vm4, %v57_v17, 0.0 }
 0x25f   :  { %v60_v19 = vadd.f32 %v59_v18, %v55_v16 }
 0x261   :  { %61 = vrot.lane.b32.xlu1 %v60_v19, %s176_s22 }
 0x265   :  { %73 = vperm.xlu1 %118, %v32_v20  }
 0x2d3   :  { %v62_v21 = vpop.permute.xlu1 %61 }
 0x2d4   :  { %v64_v22 = vsel %vm63_vm5, %v62_v21, 0.0 }
 0x2d5   :  { %v65_v23 = vadd.f32 %v64_v22, %v60_v19 }
 0x2d7   :  { %66 = vrot.lane.b32.xlu0 %v65_v23, %s177_s23 }
 0x2e4   :  { %v74_v26 = vpop.permute.xlu1 %73 }
 0x349   :  { %v67_v24 = vpop.permute.xlu0 %66 }
 0x34a   :  { %v69_v25 = vsel %vm68_vm6, %v67_v24, 0.0 }
 0x34b   :  { %v70_v27 = vadd.f32 %v69_v25, %v65_v23 }
 0x34d   :  { %v78_v28 = vadd.f32 %v70_v27, %v32_v20  ;;  %v76_v29 = vadd.f32 %v74_v26, %v70_v27 }
 0x34f   :  { %77 = vst [vmem:[#allocation6] sm:$0xf] %v76_v29  ;;  %81 = vperm.xlu0 %119, %v78_v28  }
 0x350   :  { %153 = shalt.err (!%p150_p12)
}
 0x351   :  { %s154_s29 = scalar_lea.hbm %s214_s1, 64 }
 0x352   :  { %p155_p13 = scmp.ne.s32.totalorder %s214_s1, %s154_s29  ;;  %p158_p0 = scmp.lt.u32.totalorder %s154_s29, %s214_s1 }
 0x354   :  { %p160_p1 = pnand %p158_p0, %p155_p13 }
 0x356   :  { %163 = shalt.err (!%p160_p1)
}
 0x357   :  { %97 = dma.vmem_to_hbm [thread:$0]  %s95_s25, 64, %s214_s1, [#allocation5]  }
 0x3ce   :  { %v82_v30 = vpop.permute.xlu0 %81 }
 0x3cf   :  { %84 = vst [vmem:[#allocation2] sm:$0xf] %v82_v30 }
 0x3d0   :  { %166 = dma.done.wait [#allocation5], 64  }
 0x3d1   :  { %167 = vsyncadd [#allocation5], 4294967232 }
 0x3d2   :  { %101 = vsyncpa [#allocation4], 1 }
 0x3d3   :  { %102 = vsyncpa [#allocation5], 1 }

</bundles_post_ra>
